<compile_context>
chip_gen: v5e
topology: v5e:2x2
jax: 0.10.0
libtpu: 0.0.40
codegen_flags: <defaults>
</compile_context>

<pallas_src>
import functools

import jax
import jax.numpy as jnp
from jax.experimental import pallas as pl
from jax.experimental.pallas import tpu as pltpu

LANE = 128  # TPU lane width (f32)


def _round_up(n, m):
    return ((n + m - 1) // m) * m


def mlp_kernel(x_ref, w1_ref, b1_ref, w2_ref, b2_ref, y_ref):
    # First linear + tanh. MXU matmul with f32 accumulate; tanh runs on the EUP.
    h = jnp.tanh(
        jnp.dot(x_ref[...], w1_ref[...], preferred_element_type=jnp.float32)
        + b1_ref[...]
    )
    # Second linear + tanh. Output block is a full 128-lane slab (unmasked stores).
    y_ref[...] = jnp.tanh(
        jnp.dot(h, w2_ref[...], preferred_element_type=jnp.float32)
        + b2_ref[...]
    )


@functools.partial(jax.jit, static_argnames=("tb",))
def nn_forward(x, w1, b1, w2, b2, *, tb=256):
    """Pallas-backed forward pass of NN: y = tanh(tanh(x@W1+b1)@W2+b2)."""
    B, num_input = x.shape
    num_hidden = w1.shape[1]
    num_output = w2.shape[1]

    # --- Lane-dense output padding: pad output features to a full 128-lane slab.
    n_pad = _round_up(num_output, LANE)
    if n_pad != num_output:
        w2_p = jnp.zeros((num_hidden, n_pad), jnp.float32).at[:, :num_output].set(w2)
        b2_p = jnp.zeros((1, n_pad), jnp.float32).at[:, :num_output].set(b2)
    else:
        w2_p, b2_p = w2, b2

    # --- Batch tiling: TB rows per grid step (multiple of 8 = f32 sublane).
    tb = max(8, _round_up(min(tb, _round_up(B, 8)), 8))
    b_pad = _round_up(B, tb)
    if b_pad != B:
        x_p = jnp.zeros((b_pad, num_input), jnp.float32).at[:B, :].set(x)
    else:
        x_p = x
    grid = (b_pad // tb,)

    cost = pl.CostEstimate(
        flops=2 * b_pad * (num_input * num_hidden + num_hidden * n_pad),
        transcendentals=b_pad * (num_hidden + n_pad),
        bytes_accessed=4
        * (
            b_pad * num_input
            + b_pad * n_pad
            + num_input * num_hidden
            + num_hidden * n_pad
            + num_hidden
            + n_pad
        ),
    )

    y_pad = pl.pallas_call(
        mlp_kernel,
        out_shape=jax.ShapeDtypeStruct((b_pad, n_pad), jnp.float32),
        grid=grid,
        in_specs=[
            # x: tiled over the batch axis (auto double-buffered DMA pipeline).
            pl.BlockSpec((tb, num_input), lambda i: (i, 0)),
            # Weights / biases: full arrays, VMEM-resident across all grid steps.
            pl.BlockSpec((num_input, num_hidden), lambda i: (0, 0)),
            pl.BlockSpec((1, num_hidden), lambda i: (0, 0)),
            pl.BlockSpec((num_hidden, n_pad), lambda i: (0, 0)),
            pl.BlockSpec((1, n_pad), lambda i: (0, 0)),
        ],
        out_specs=pl.BlockSpec((tb, n_pad), lambda i: (i, 0)),
        compiler_params=pltpu.CompilerParams(
            dimension_semantics=("parallel",),  # shard batch tiles across TCs on v7x
        ),
        cost_estimate=cost,
    )(x_p, w1, b1, w2_p, b2_p)

    # Strip batch / lane padding.
    return y_pad[:B, :num_output]


def reference_forward(x, w1, b1, w2, b2):
    h = jnp.tanh(x @ w1 + b1)
    return jnp.tanh(h @ w2 + b2)


if __name__ == "__main__":
    num_input, num_hidden, num_output = 32, 64, 16

    key = jax.random.PRNGKey(0)
    kx, k1, k2, k3, k4, kx2 = jax.random.split(key, 6)

    # Deterministic parameter init (uniform, like PyTorch's default Linear init scale).
    bound1 = 1.0 / jnp.sqrt(num_input)
    bound2 = 1.0 / jnp.sqrt(num_hidden)
    w1 = jax.random.uniform(k1, (num_input, num_hidden), jnp.float32, -bound1, bound1)
    b1 = jax.random.uniform(k2, (1, num_hidden), jnp.float32, -bound1, bound1)
    w2 = jax.random.uniform(k3, (num_hidden, num_output), jnp.float32, -bound2, bound2)
    b2 = jax.random.uniform(k4, (1, num_output), jnp.float32, -bound2, bound2)

    # Toy batch (single grid step).
    x_small = jax.random.normal(kx, (8, num_input), dtype=jnp.float32)
    y_small = nn_forward(x_small, w1, b1, w2, b2)
    jax.block_until_ready(y_small)
    assert y_small.shape == (8, num_output)
    assert jnp.allclose(y_small, reference_forward(x_small, w1, b1, w2, b2),
                        atol=1e-5, rtol=1e-5)

    # Larger batch exercising the tiled/pipelined path (grid > 1).
    x_big = jax.random.normal(kx2, (512, num_input), dtype=jnp.float32)
    y_big = nn_forward(x_big, w1, b1, w2, b2)
    jax.block_until_ready(y_big)
    assert y_big.shape == (512, num_output)
    assert jnp.allclose(y_big, reference_forward(x_big, w1, b1, w2, b2),
                        atol=1e-5, rtol=1e-5)

    print("KERNEL_OK")
</pallas_src>

<mosaic_0001>
module attributes {stable_mosaic.version = 11 : i64} {
  func.func @mlp_kernel(%arg0: i32, %arg1: memref<8x32xf32, #tpu.memory_space<vmem>>, %arg2: memref<32x64xf32, #tpu.memory_space<vmem>>, %arg3: memref<1x64xf32, #tpu.memory_space<vmem>>, %arg4: memref<64x128xf32, #tpu.memory_space<vmem>>, %arg5: memref<1x128xf32, #tpu.memory_space<vmem>>, %arg6: memref<8x128xf32, #tpu.memory_space<vmem>>) attributes {dimension_semantics = [#tpu.dimension_semantics<parallel>], iteration_bounds = array<i64: 1>, scalar_prefetch = 0 : i64, scratch_operands = 0 : i64, tpu.core_type = #tpu.core_type<tc>, window_params = [{transform_indices = @transform_0, window_bounds = array<i64: 8, 32>}, {pipeline_mode = #tpu.pipeline_mode<synchronous>, transform_indices = @transform_1, window_bounds = array<i64: 32, 64>}, {pipeline_mode = #tpu.pipeline_mode<synchronous>, transform_indices = @transform_2, window_bounds = array<i64: 1, 64>}, {pipeline_mode = #tpu.pipeline_mode<synchronous>, transform_indices = @transform_3, window_bounds = array<i64: 64, 128>}, {pipeline_mode = #tpu.pipeline_mode<synchronous>, transform_indices = @transform_4, window_bounds = array<i64: 1, 128>}, {transform_indices = @transform_5, window_bounds = array<i64: 8, 128>}]} {
    %c0 = arith.constant 0 : index
    %c0_0 = arith.constant 0 : index
    %0 = vector.load %arg1[%c0, %c0_0] : memref<8x32xf32, #tpu.memory_space<vmem>>, vector<8x32xf32>
    %c0_1 = arith.constant 0 : index
    %c0_2 = arith.constant 0 : index
    %1 = vector.load %arg2[%c0_1, %c0_2] : memref<32x64xf32, #tpu.memory_space<vmem>>, vector<32x64xf32>
    %cst = arith.constant dense<0.000000e+00> : vector<8x64xf32>
    %2 = tpu.matmul %0, %1, %cst {dimension_numbers = #tpu.dot_dimension_numbers<[1], [0], [0], [1], [0, 0, 1, 1], [], []>} : vector<8x32xf32>, vector<32x64xf32>, vector<8x64xf32> -> vector<8x64xf32>
    %c0_3 = arith.constant 0 : index
    %c0_4 = arith.constant 0 : index
    %3 = vector.load %arg3[%c0_3, %c0_4] : memref<1x64xf32, #tpu.memory_space<vmem>>, vector<1x64xf32>
    %4 = vector.broadcast %3 : vector<1x64xf32> to vector<8x64xf32>
    %5 = arith.addf %2, %4 : vector<8x64xf32>
    %6 = math.tanh %5 : vector<8x64xf32>
    %c0_5 = arith.constant 0 : index
    %c0_6 = arith.constant 0 : index
    %7 = vector.load %arg4[%c0_5, %c0_6] : memref<64x128xf32, #tpu.memory_space<vmem>>, vector<64x128xf32>
    %cst_7 = arith.constant dense<0.000000e+00> : vector<8x128xf32>
    %8 = tpu.matmul %6, %7, %cst_7 {dimension_numbers = #tpu.dot_dimension_numbers<[1], [0], [0], [1], [0, 0, 1, 1], [], []>} : vector<8x64xf32>, vector<64x128xf32>, vector<8x128xf32> -> vector<8x128xf32>
    %c0_8 = arith.constant 0 : index
    %c0_9 = arith.constant 0 : index
    %9 = vector.load %arg5[%c0_8, %c0_9] : memref<1x128xf32, #tpu.memory_space<vmem>>, vector<1x128xf32>
    %10 = vector.broadcast %9 : vector<1x128xf32> to vector<8x128xf32>
    %11 = arith.addf %8, %10 : vector<8x128xf32>
    %12 = math.tanh %11 : vector<8x128xf32>
    %c0_10 = arith.constant 0 : index
    %c0_11 = arith.constant 0 : index
    %13 = vector.load %arg6[%c0_10, %c0_11] : memref<8x128xf32, #tpu.memory_space<vmem>>, vector<8x128xf32>
    tpu.vector_store %arg6[%c0_10, %c0_11], %12 {strides = array<i32>} : memref<8x128xf32, #tpu.memory_space<vmem>>, vector<8x128xf32>,
    return
  }
  func.func @transform_0(%arg0: i32) -> (i32, i32) {
    %c0_i32 = arith.constant 0 : i32
    %c0_i32_0 = arith.constant 0 : i32
    return %arg0, %c0_i32 : i32, i32
  }
  func.func @transform_1(%arg0: i32) -> (i32, i32) {
    %c0_i32 = arith.constant 0 : i32
    %c0_i32_0 = arith.constant 0 : i32
    %c0_i32_1 = arith.constant 0 : i32
    return %c0_i32, %c0_i32_0 : i32, i32
  }
  func.func @transform_2(%arg0: i32) -> (i32, i32) {
    %c0_i32 = arith.constant 0 : i32
    %c0_i32_0 = arith.constant 0 : i32
    %c0_i32_1 = arith.constant 0 : i32
    return %c0_i32, %c0_i32_0 : i32, i32
  }
  func.func @transform_3(%arg0: i32) -> (i32, i32) {
    %c0_i32 = arith.constant 0 : i32
    %c0_i32_0 = arith.constant 0 : i32
    %c0_i32_1 = arith.constant 0 : i32
    return %c0_i32, %c0_i32_0 : i32, i32
  }
  func.func @transform_4(%arg0: i32) -> (i32, i32) {
    %c0_i32 = arith.constant 0 : i32
    %c0_i32_0 = arith.constant 0 : i32
    %c0_i32_1 = arith.constant 0 : i32
    return %c0_i32, %c0_i32_0 : i32, i32
  }
  func.func @transform_5(%arg0: i32) -> (i32, i32) {
    %c0_i32 = arith.constant 0 : i32
    %c0_i32_0 = arith.constant 0 : i32
    return %arg0, %c0_i32 : i32, i32
  }
}

</mosaic_0001>

<bundles_post_ra>
// kernel: nn_forward.1
= control target key start
LH: loop header
LB: loop body
LE: loop exit
PB: predicated region body
PF: predicated region fallthrough
CT: control target
= control target key end

     0   :  { %s223_s0 = inlined_call_operand.vmem [shape: f32[8,32], index: 0, kind: input, shape index: {}]   ;;  %s224_s1 = inlined_call_operand.vmem [shape: f32[32,64], index: 1, kind: input, shape index: {}]   ;;  %s225_s2 = inlined_call_operand.vmem [shape: f32[1,64], index: 2, kind: input, shape index: {}]   ;;  %s226_s3 = inlined_call_operand.vmem [shape: f32[64,128], index: 3, kind: input, shape index: {}]   ;;  %s227_s4 = inlined_call_operand.vmem [shape: f32[1,128], index: 4, kind: input, shape index: {}]   ;;  %s228_s5 = inlined_call_operand.hbm [shape: f32[8,128], index: 5, kind: output, shape index: {}]  }
   0x1   :  { %v25_v0 = vld [vmem:[%s224_s1 + $0x18] sm:$0xff]  ;;  %v24_v1 = vld [vmem:[%s224_s1 + $0x10] sm:$0xff]  ;;  %v23_v3 = vld [vmem:[%s224_s1 + $0x8] sm:$0xff] }
   0x2   :  { %46 = vmatpush.msra.mxu0 %v25_v0  ;;  %v62_v2 = vld [vmem:[%s226_s3 + $0x38] sm:$0xff]  ;;  %v61_v4 = vld [vmem:[%s226_s3 + $0x30] sm:$0xff]  ;;  %v60_v5 = vld [vmem:[%s226_s3 + $0x28] sm:$0xff] }
   0x3   :  { %79 = vmatpush.msra.mxu1 %v62_v2 }
   0x4   :  { %47 = vmatpush.msra.mxu0 %v24_v1 }
   0x5   :  { %10 = vsyncpa [#allocation3], 0  ;;  %v22_v6 = vld [vmem:[%s224_s1] sm:$0xff]  ;;  %80 = vmatpush.msra.mxu1 %v61_v4  ;;  %vm30_vm0 = vcmask 261120   ;;  %v58_v9 = vld [vmem:[%s226_s3 + $0x18] sm:$0xff]  ;;  %vm67_vm1 = vcmask 523264  }
   0x6   :  { %48 = vmatpush.msra.mxu0 %v23_v3  ;;  %v21_v7 = vld [vmem:[%s223_s0] sm:$0xff]  ;;  %v57_v10 = vld [vmem:[%s226_s3 + $0x10] sm:$0xff]  ;;  %v56_v11 = vld [vmem:[%s226_s3 + $0x8] sm:$0xff]  ;;  %s100_s24 = sshll.u32 %s228_s5, 4  ;;  %s101_s24 = int_to_ptr.hbm [resolvable:$true] %s100_s24 }
   0x7   :  { %81 = vmatpush.msra.mxu1 %v60_v5  ;;  %v59_v8 = vld [vmem:[%s226_s3 + $0x20] sm:$0xff] }
   0x8   :  { %49 = vmatpush.msra.mxu0 %v22_v6  ;;  %v55_v12 = vld [vmem:[%s226_s3] sm:$0xff]  ;;  %s144_s3 = smov [#allocation2]  }
   0x9   :  { %109 = vmatmul.msk.f32.vlgmr.msra.gmra.mxu0 %vm30_vm0, %v21_v7  ;;  %82 = vmatpush.msra.mxu1 %v59_v8  ;;  %v112_v13 = vld [vmem:[%s225_s2] ss:$0 sm:$0xff]  ;;  %s98_s21 = sshll.u32 %s144_s3, 4  ;;  %s99_s21 = int_to_ptr.vmem [resolvable:$true] %s98_s21 }
   0xa   :  { %v113_v17 = vld [vmem:[%s227_s4] ss:$0 sm:$0xff] }
   0xb   :  { %83 = vmatpush.msra.mxu1 %v58_v9 }
   0xd   :  { %84 = vmatpush.msra.mxu1 %v57_v10 }
   0xf   :  { %85 = vmatpush.msra.mxu1 %v56_v11 }
  0x11   :  { %86 = vmatpush.msra.mxu1 %v55_v12 }
  0x86   :  { %v51_v14 = vpop.f32.mrf.mxu0 }
  0x87   :  { %v52_v15 = vadd.f32 %v112_v13, %v51_v14 }
  0x89   :  { %114 = vtanh.f32 %v52_v15 }
  0x8f   :  { %v115_v16 = vpop.eup %114 }
  0x90   :  { %110 = vmatmul.msk.f32.vlgmr.msra.gmra.mxu1 %vm67_vm1, %v115_v16 }
 0x10d   :  { %v88_v18 = vpop.f32.mrf.mxu1 }
 0x10e   :  { %v89_v19 = vadd.f32 %v113_v17, %v88_v18 }
 0x110   :  { %116 = vtanh.f32 %v89_v19 }
 0x116   :  { %v117_v20 = vpop.eup %116 }
 0x117   :  { %92 = vst [vmem:[#allocation2] sm:$0xff] %v117_v20 }
 0x118   :  { %103 = dma.vmem_to_hbm [thread:$0]  %s99_s21, 128, %s101_s24, [#allocation3]  }
 0x119   :  { %142 = dma.done.wait [#allocation3], 128  }
 0x11a   :  { %143 = vsyncadd [#allocation3], 4294967168 }
 0x11b   :  { %108 = vsyncpa [#allocation3], 1 }

</bundles_post_ra>
